<compile_context>
chip_gen: v5e
topology: v5e:2x2
jax: 0.10.0
libtpu: 0.0.40
codegen_flags: <defaults>
</compile_context>

<pallas_src>
import jax
import jax.numpy as jnp
from jax import lax
from jax.experimental import pallas as pl
from jax.experimental.pallas import tpu as pltpu


def _pooler_kernel(x_ref, w_ref, b_ref, o_ref):
    # x_ref : [tm, H]   CLS-token activations (native dtype; bf16 goes straight to MXU)
    # w_ref : [tn, H]   nn.Linear weight slice in [out, in] layout (no transpose made)
    # b_ref : [1, tn]   bias slice
    # o_ref : [tm, tn]  pooled output tile
    y = lax.dot_general(
        x_ref[...], w_ref[...],
        dimension_numbers=(((1,), (1,)), ((), ())),   # x @ W.T fed to the MXU directly
        preferred_element_type=jnp.float32,
    )
    y = y + b_ref[...].astype(jnp.float32)            # f32 epilogue
    o_ref[...] = jnp.tanh(y).astype(o_ref.dtype)      # single cast on the final store


def bert_pooler(hidden_states: jax.Array, weight: jax.Array, bias: jax.Array,
                *, block_b: int = 256) -> jax.Array:
    """hidden_states: [B, S, H], weight: [H, H] (nn.Linear [out, in]), bias: [H] -> [B, H]."""
    B, S, H = hidden_states.shape
    assert weight.shape == (H, H) and bias.shape == (H,)

    # (1) Fold the CLS slice into the kernel's BlockSpec when H is lane-aligned:
    #     block column 0 of width H over the [B, S*H] view is exactly token 0.
    if H % 128 == 0 or S == 1:
        x2d = hidden_states.reshape(B, S * H)          # metadata-only reshape
    else:
        # Tiny / unaligned H (smoke test): XLA slice keeps the x block minor dim equal
        # to the full array dim, so it stays (8,128)-legal.
        x2d = hidden_states[:, 0, :]

    bias2d = bias.reshape(1, H)

    # Batch tiling: full B in one tile when it fits, else 256-row tiles (MXU-friendly).
    tm = B if B <= block_b else block_b
    grid_b = pl.cdiv(B, tm)

    # Output-H (N) tiling: only when a single batch tile would leave the second
    # TensorCore idle (v7x) — each core then reads half of W instead of a copy.
    if grid_b == 1 and H > 512 and H % 256 == 0:
        tn = H // 2
    else:
        tn = H
    grid_n = pl.cdiv(H, tn)

    n_sem = "parallel"
    # Avoid batch-parallel megacore at small B: it would duplicate the dominant W read.
    b_sem = "parallel" if grid_b >= 4 else "arbitrary"

    act_bytes = jnp.dtype(hidden_states.dtype).itemsize
    cost = pl.CostEstimate(
        flops=2 * B * H * H,
        transcendentals=B * H,
        bytes_accessed=(B * H * act_bytes                       # CLS activations
                        + H * H * jnp.dtype(weight.dtype).itemsize
                        + H * jnp.dtype(bias.dtype).itemsize
                        + B * H * act_bytes),                   # output
    )

    def build(single_buffer_resident: bool):
        if single_buffer_resident:
            def resident(shape, imap):
                return pl.BlockSpec(shape, imap, pipeline_mode=pl.Buffered(1))
        else:
            def resident(shape, imap):
                return pl.BlockSpec(shape, imap)
        return pl.pallas_call(
            _pooler_kernel,
            out_shape=jax.ShapeDtypeStruct((B, H), hidden_states.dtype),
            grid_spec=pltpu.PrefetchScalarGridSpec(
                num_scalar_prefetch=0,
                grid=(grid_n, grid_b),                           # N outer -> W resident over batch tiles
                in_specs=[
                    pl.BlockSpec((tm, H), lambda j, i: (i, 0)),  # CLS tile = block column 0
                    resident((tn, H), lambda j, i: (j, 0)),      # weight, [out, in], single-buffered
                    resident((1, tn), lambda j, i: (0, j)),      # bias slice, single-buffered
                ],
                out_specs=pl.BlockSpec((tm, tn), lambda j, i: (i, j)),
            ),
            compiler_params=pltpu.CompilerParams(
                dimension_semantics=(n_sem, b_sem),
            ),
            cost_estimate=cost,
        )

    try:
        return build(True)(x2d, weight, bias2d)
    except Exception:
        # JAX build without pipeline_mode / Buffered(1) support: identical kernel with
        # default (double-buffered) resident blocks — correctness unchanged.
        return build(False)(x2d, weight, bias2d)


def _reference(hidden_states, weight, bias):
    x = hidden_states[:, 0, :].astype(jnp.float32)
    w = weight.astype(jnp.float32)
    b = bias.astype(jnp.float32)
    return jnp.tanh(x @ w.T + b)


def _run_case(key, B, S, H, dtype, tol):
    k1, k2, k3 = jax.random.split(key, 3)
    hidden_states = jax.random.normal(k1, (B, S, H), dtype=jnp.float32).astype(dtype)
    # nn.Linear(hidden_size, hidden_size) params in PyTorch [out, in] layout.
    weight = (jax.random.normal(k2, (H, H), dtype=jnp.float32) * 0.02).astype(dtype)
    bias = (jax.random.normal(k3, (H,), dtype=jnp.float32) * 0.02).astype(dtype)

    out = jax.block_until_ready(bert_pooler(hidden_states, weight, bias))
    ref = _reference(hidden_states, weight, bias)

    assert out.shape == (B, H), (out.shape, (B, H))
    assert out.dtype == dtype
    assert jnp.allclose(out.astype(jnp.float32), ref, atol=tol, rtol=tol), \
        f"mismatch vs reference (B={B}, S={S}, H={H}, dtype={dtype})"


if __name__ == "__main__":
    key = jax.random.PRNGKey(0)
    k_small, k_tiled, k_nsplit = jax.random.split(key, 3)

    # 1) Small canonical shapes (unaligned-H fallback path).
    _run_case(k_small, B=2, S=8, H=32, dtype=jnp.float32, tol=1e-3)

    # 2) Realistic BERT-ish size in bf16: exercises the folded CLS slice, B > block_b
    #    batch tiling with a partial last tile, and native bf16 MXU feed.
    _run_case(k_tiled, B=300, S=4, H=768, dtype=jnp.bfloat16, tol=1e-2)

    # 3) Single batch tile with large H: exercises the N-split (W halved across cores).
    _run_case(k_nsplit, B=8, S=2, H=1024, dtype=jnp.bfloat16, tol=1e-2)

    print("KERNEL_OK")
</pallas_src>

<mosaic_0001>
module attributes {stable_mosaic.version = 11 : i64} {
  func.func @_pooler_kernel(%arg0: i32, %arg1: i32, %arg2: memref<2x32xf32, #tpu.memory_space<vmem>>, %arg3: memref<32x32xf32, #tpu.memory_space<vmem>>, %arg4: memref<1x32xf32, #tpu.memory_space<vmem>>, %arg5: memref<2x32xf32, #tpu.memory_space<vmem>>) attributes {dimension_semantics = [#tpu.dimension_semantics<parallel>, #tpu.dimension_semantics<arbitrary>], iteration_bounds = array<i64: 1, 1>, scalar_prefetch = 0 : i64, scratch_operands = 0 : i64, tpu.core_type = #tpu.core_type<tc>, window_params = [{transform_indices = @transform_0, window_bounds = array<i64: 2, 32>}, {pipeline_mode = #tpu.pipeline_mode<synchronous>, transform_indices = @transform_1, window_bounds = array<i64: 32, 32>}, {pipeline_mode = #tpu.pipeline_mode<synchronous>, transform_indices = @transform_2, window_bounds = array<i64: 1, 32>}, {transform_indices = @transform_3, window_bounds = array<i64: 2, 32>}]} {
    %c0 = arith.constant 0 : index
    %c0_0 = arith.constant 0 : index
    %0 = vector.load %arg2[%c0, %c0_0] : memref<2x32xf32, #tpu.memory_space<vmem>>, vector<2x32xf32>
    %c0_1 = arith.constant 0 : index
    %c0_2 = arith.constant 0 : index
    %1 = vector.load %arg3[%c0_1, %c0_2] : memref<32x32xf32, #tpu.memory_space<vmem>>, vector<32x32xf32>
    %cst = arith.constant dense<0.000000e+00> : vector<2x32xf32>
    %2 = tpu.matmul %0, %1, %cst {dimension_numbers = #tpu.dot_dimension_numbers<[1], [1], [0], [0], [0, 0, 1, 0], [], []>} : vector<2x32xf32>, vector<32x32xf32>, vector<2x32xf32> -> vector<2x32xf32>
    %c0_3 = arith.constant 0 : index
    %c0_4 = arith.constant 0 : index
    %3 = vector.load %arg4[%c0_3, %c0_4] : memref<1x32xf32, #tpu.memory_space<vmem>>, vector<1x32xf32>
    %4 = vector.broadcast %3 : vector<1x32xf32> to vector<2x32xf32>
    %5 = arith.addf %2, %4 : vector<2x32xf32>
    %6 = math.tanh %5 : vector<2x32xf32>
    %c0_5 = arith.constant 0 : index
    %c0_6 = arith.constant 0 : index
    %7 = vector.load %arg5[%c0_5, %c0_6] : memref<2x32xf32, #tpu.memory_space<vmem>>, vector<2x32xf32>
    tpu.vector_store %arg5[%c0_5, %c0_6], %6 {strides = array<i32>} : memref<2x32xf32, #tpu.memory_space<vmem>>, vector<2x32xf32>,
    return
  }
  func.func @transform_0(%arg0: i32, %arg1: i32) -> (i32, i32) {
    %c0_i32 = arith.constant 0 : i32
    %c0_i32_0 = arith.constant 0 : i32
    return %arg1, %c0_i32 : i32, i32
  }
  func.func @transform_1(%arg0: i32, %arg1: i32) -> (i32, i32) {
    %c0_i32 = arith.constant 0 : i32
    %c0_i32_0 = arith.constant 0 : i32
    return %arg0, %c0_i32 : i32, i32
  }
  func.func @transform_2(%arg0: i32, %arg1: i32) -> (i32, i32) {
    %c0_i32 = arith.constant 0 : i32
    %c0_i32_0 = arith.constant 0 : i32
    return %c0_i32, %arg0 : i32, i32
  }
  func.func @transform_3(%arg0: i32, %arg1: i32) -> (i32, i32) {
    %c0_i32 = arith.constant 0 : i32
    return %arg1, %arg0 : i32, i32
  }
}

module attributes {stable_mosaic.version = 11 : i64} {
  func.func @_pooler_kernel(%arg0: i32, %arg1: i32, %arg2: memref<2x32xf32, #tpu.memory_space<vmem>>, %arg3: memref<32x32xf32, #tpu.memory_space<vmem>>, %arg4: memref<1x32xf32, #tpu.memory_space<vmem>>, %arg5: memref<2x32xf32, #tpu.memory_space<vmem>>) attributes {dimension_semantics = [#tpu.dimension_semantics<parallel>, #tpu.dimension_semantics<arbitrary>], iteration_bounds = array<i64: 1, 1>, scalar_prefetch = 0 : i64, scratch_operands = 0 : i64, tpu.core_type = #tpu.core_type<tc>, window_params = [{transform_indices = @transform_0, window_bounds = array<i64: 2, 32>}, {transform_indices = @transform_1, window_bounds = array<i64: 32, 32>}, {transform_indices = @transform_2, window_bounds = array<i64: 1, 32>}, {transform_indices = @transform_3, window_bounds = array<i64: 2, 32>}]} {
    %c0 = arith.constant 0 : index
    %c0_0 = arith.constant 0 : index
    %0 = vector.load %arg2[%c0, %c0_0] : memref<2x32xf32, #tpu.memory_space<vmem>>, vector<2x32xf32>
    %c0_1 = arith.constant 0 : index
    %c0_2 = arith.constant 0 : index
    %1 = vector.load %arg3[%c0_1, %c0_2] : memref<32x32xf32, #tpu.memory_space<vmem>>, vector<32x32xf32>
    %cst = arith.constant dense<0.000000e+00> : vector<2x32xf32>
    %2 = tpu.matmul %0, %1, %cst {dimension_numbers = #tpu.dot_dimension_numbers<[1], [1], [0], [0], [0, 0, 1, 0], [], []>} : vector<2x32xf32>, vector<32x32xf32>, vector<2x32xf32> -> vector<2x32xf32>
    %c0_3 = arith.constant 0 : index
    %c0_4 = arith.constant 0 : index
    %3 = vector.load %arg4[%c0_3, %c0_4] : memref<1x32xf32, #tpu.memory_space<vmem>>, vector<1x32xf32>
    %4 = vector.broadcast %3 : vector<1x32xf32> to vector<2x32xf32>
    %5 = arith.addf %2, %4 : vector<2x32xf32>
    %6 = math.tanh %5 : vector<2x32xf32>
    %c0_5 = arith.constant 0 : index
    %c0_6 = arith.constant 0 : index
    %7 = vector.load %arg5[%c0_5, %c0_6] : memref<2x32xf32, #tpu.memory_space<vmem>>, vector<2x32xf32>
    tpu.vector_store %arg5[%c0_5, %c0_6], %6 {strides = array<i32>} : memref<2x32xf32, #tpu.memory_space<vmem>>, vector<2x32xf32>,
    return
  }
  func.func @transform_0(%arg0: i32, %arg1: i32) -> (i32, i32) {
    %c0_i32 = arith.constant 0 : i32
    %c0_i32_0 = arith.constant 0 : i32
    return %arg1, %c0_i32 : i32, i32
  }
  func.func @transform_1(%arg0: i32, %arg1: i32) -> (i32, i32) {
    %c0_i32 = arith.constant 0 : i32
    %c0_i32_0 = arith.constant 0 : i32
    return %arg0, %c0_i32 : i32, i32
  }
  func.func @transform_2(%arg0: i32, %arg1: i32) -> (i32, i32) {
    %c0_i32 = arith.constant 0 : i32
    %c0_i32_0 = arith.constant 0 : i32
    return %c0_i32, %arg0 : i32, i32
  }
  func.func @transform_3(%arg0: i32, %arg1: i32) -> (i32, i32) {
    %c0_i32 = arith.constant 0 : i32
    return %arg1, %arg0 : i32, i32
  }
}

</mosaic_0001>

<bundles_post_ra>
// kernel: tpu_custom_call.1
= control target key start
LH: loop header
LB: loop body
LE: loop exit
PB: predicated region body
PF: predicated region fallthrough
CT: control target
= control target key end

     0   :  { %8 = vsyncpa [#allocation3], 0  ;;  %s239_s0 = inlined_call_operand.hbm [shape: f32[2,32], index: 0, kind: input, shape index: {}]   ;;  %s240_s1 = inlined_call_operand.hbm [shape: f32[32,32], index: 1, kind: input, shape index: {}]   ;;  %s241_s2 = inlined_call_operand.vmem [shape: f32[1,32], index: 2, kind: input, shape index: {}]   ;;  %s242_s3 = inlined_call_operand.hbm [shape: f32[2,32], index: 3, kind: output, shape index: {}]  }
   0x1   :  { %9 = vsyncpa [#allocation6], 0 }
   0x2   :  { %10 = vsyncpa [#allocation4], 0  ;;  %s16_s14 = sshll.u32 %s239_s0, 4  ;;  %s202_s15 = smov [#allocation2]   ;;  %s17_s14 = int_to_ptr.hbm [resolvable:$true] %s16_s14 }
   0x3   :  { %s18_s16 = sshll.u32 %s202_s15, 4  ;;  %s26_s19 = sshll.u32 %s240_s1, 4  ;;  %s19_s16 = int_to_ptr.vmem [resolvable:$true] %s18_s16  ;;  %s27_s19 = int_to_ptr.hbm [resolvable:$true] %s26_s19 }
   0x4   :  { %21 = dma.hbm_to_vmem [thread:$0]  %s17_s14, 32, %s19_s16, [#allocation3]  }
   0x5   :  { %s203_s20 = smov [#allocation5]   ;;  %s204_s22 = smov 128  }
   0x6   :  { %s28_s21 = sshll.u32 %s203_s20, 4  ;;  %s205_s23 = smov 8   ;;  %s29_s21 = int_to_ptr.vmem [resolvable:$true] %s28_s21 }
   0x7   :  { %34 = dma.hbm_to_vmem [thread:$0]  %s27_s19, 512, %s29_s21, [#allocation6], %s204_s22, %s204_s22, %s205_s23  }
   0x8   :  { %196 = dma.done.wait [#allocation3], 32  }
   0x9   :  { %197 = vsyncadd [#allocation3], 4294967264 }
   0xa   :  { %198 = dma.done.wait [#allocation6], 512  }
   0xb   :  { %199 = vsyncadd [#allocation6], 4294966784  ;;  %vm54_vm0 = vcmask 261120   ;;  %v49_v0 = vld [vmem:[#allocation5 + $0x18] sm:$0xff]  ;;  %v48_v1 = vld [vmem:[#allocation5 + $0x10] sm:$0xff]  ;;  %s206_s24 = smov [#allocation7]  }
   0xc   :  { %111 = vmatpush.xpose.msk.msra.mxu0 %vm54_vm0, %v49_v0  ;;  %v47_v2 = vld [vmem:[#allocation5 + $0x8] sm:$0xff]  ;;  %v46_v3 = vld [vmem:[#allocation5] sm:$0xff]  ;;  %v45_v4 = vld [vmem:[#allocation2] sm:$0x3]  ;;  %s98_s25 = sshll.u32 %s206_s24, 4  ;;  %s100_s28 = sshll.u32 %s242_s3, 4  ;;  %s99_s25 = int_to_ptr.vmem [resolvable:$true] %s98_s25  ;;  %s101_s28 = int_to_ptr.hbm [resolvable:$true] %s100_s28 }
   0xd   :  { %v121_v5 = vld [vmem:[%s241_s2] ss:$0 sm:$0xff]  ;;  %vm91_vm1 = vcmask 254976  }
  0x10   :  { %112 = vmatpush.xpose.msk.msra.mxu0 %vm54_vm0, %v48_v1 }
  0x14   :  { %113 = vmatpush.xpose.msk.msra.mxu0 %vm54_vm0, %v47_v2 }
  0x18   :  { %114 = vmatpush.xpose.msk.msra.mxu0 %vm54_vm0, %v46_v3 }
  0x1b   :  { %115 = vmatmul.msk.f32.vlgmr.msra.gmra.mxu0 %vm54_vm0, %v45_v4 }
  0x98   :  { %v87_v6 = vpop.f32.mrf.mxu0 }
  0x99   :  { %v88_v7 = vadd.f32 %v121_v5, %v87_v6 }
  0x9b   :  { %122 = vtanh.f32 %v88_v7 }
  0xa1   :  { %v123_v8 = vpop.eup %122 }
  0xa2   :  { %92 = vst.msk [vmem:[#allocation7] sm:$0x3] %vm91_vm1, %v123_v8 }
  0xa3   :  { %103 = dma.vmem_to_hbm [thread:$0]  %s99_s25, 32, %s101_s28, [#allocation4]  }
  0xa4   :  { %200 = dma.done.wait [#allocation4], 32  }
  0xa5   :  { %201 = vsyncadd [#allocation4], 4294967264 }
  0xa6   :  { %108 = vsyncpa [#allocation3], 1 }
  0xa7   :  { %109 = vsyncpa [#allocation6], 1 }
  0xa8   :  { %110 = vsyncpa [#allocation4], 1 }

// kernel: tpu_custom_call.1
= control target key start
LH: loop header
LB: loop body
LE: loop exit
PB: predicated region body
PF: predicated region fallthrough
CT: control target
= control target key end

     0   :  { %8 = vsyncpa [#allocation3], 0  ;;  %s239_s0 = inlined_call_operand.hbm [shape: f32[2,32], index: 0, kind: input, shape index: {}]   ;;  %s240_s1 = inlined_call_operand.hbm [shape: f32[32,32], index: 1, kind: input, shape index: {}]   ;;  %s241_s2 = inlined_call_operand.vmem [shape: f32[1,32], index: 2, kind: input, shape index: {}]   ;;  %s242_s3 = inlined_call_operand.hbm [shape: f32[2,32], index: 3, kind: output, shape index: {}]  }
   0x1   :  { %9 = vsyncpa [#allocation6], 0 }
   0x2   :  { %10 = vsyncpa [#allocation4], 0  ;;  %s16_s14 = sshll.u32 %s239_s0, 4  ;;  %s202_s15 = smov [#allocation2]   ;;  %s17_s14 = int_to_ptr.hbm [resolvable:$true] %s16_s14 }
   0x3   :  { %s18_s16 = sshll.u32 %s202_s15, 4  ;;  %s26_s19 = sshll.u32 %s240_s1, 4  ;;  %s19_s16 = int_to_ptr.vmem [resolvable:$true] %s18_s16  ;;  %s27_s19 = int_to_ptr.hbm [resolvable:$true] %s26_s19 }
   0x4   :  { %21 = dma.hbm_to_vmem [thread:$0]  %s17_s14, 32, %s19_s16, [#allocation3]  }
   0x5   :  { %s203_s20 = smov [#allocation5]   ;;  %s204_s22 = smov 128  }
   0x6   :  { %s28_s21 = sshll.u32 %s203_s20, 4  ;;  %s205_s23 = smov 8   ;;  %s29_s21 = int_to_ptr.vmem [resolvable:$true] %s28_s21 }
   0x7   :  { %34 = dma.hbm_to_vmem [thread:$0]  %s27_s19, 512, %s29_s21, [#allocation6], %s204_s22, %s204_s22, %s205_s23  }
   0x8   :  { %196 = dma.done.wait [#allocation3], 32  }
   0x9   :  { %197 = vsyncadd [#allocation3], 4294967264 }
   0xa   :  { %198 = dma.done.wait [#allocation6], 512  }
   0xb   :  { %199 = vsyncadd [#allocation6], 4294966784  ;;  %vm54_vm0 = vcmask 261120   ;;  %v49_v0 = vld [vmem:[#allocation5 + $0x18] sm:$0xff]  ;;  %v48_v1 = vld [vmem:[#allocation5 + $0x10] sm:$0xff]  ;;  %s206_s24 = smov [#allocation7]  }
   0xc   :  { %111 = vmatpush.xpose.msk.msra.mxu0 %vm54_vm0, %v49_v0  ;;  %v47_v2 = vld [vmem:[#allocation5 + $0x8] sm:$0xff]  ;;  %v46_v3 = vld [vmem:[#allocation5] sm:$0xff]  ;;  %v45_v4 = vld [vmem:[#allocation2] sm:$0x3]  ;;  %s98_s25 = sshll.u32 %s206_s24, 4  ;;  %s100_s28 = sshll.u32 %s242_s3, 4  ;;  %s99_s25 = int_to_ptr.vmem [resolvable:$true] %s98_s25  ;;  %s101_s28 = int_to_ptr.hbm [resolvable:$true] %s100_s28 }
   0xd   :  { %v121_v5 = vld [vmem:[%s241_s2] ss:$0 sm:$0xff]  ;;  %vm91_vm1 = vcmask 254976  }
  0x10   :  { %112 = vmatpush.xpose.msk.msra.mxu0 %vm54_vm0, %v48_v1 }
  0x14   :  { %113 = vmatpush.xpose.msk.msra.mxu0 %vm54_vm0, %v47_v2 }
  0x18   :  { %114 = vmatpush.xpose.msk.msra.mxu0 %vm54_vm0, %v46_v3 }
  0x1b   :  { %115 = vmatmul.msk.f32.vlgmr.msra.gmra.mxu0 %vm54_vm0, %v45_v4 }
  0x98   :  { %v87_v6 = vpop.f32.mrf.mxu0 }
  0x99   :  { %v88_v7 = vadd.f32 %v121_v5, %v87_v6 }
  0x9b   :  { %122 = vtanh.f32 %v88_v7 }
  0xa1   :  { %v123_v8 = vpop.eup %122 }
  0xa2   :  { %92 = vst.msk [vmem:[#allocation7] sm:$0x3] %vm91_vm1, %v123_v8 }
  0xa3   :  { %103 = dma.vmem_to_hbm [thread:$0]  %s99_s25, 32, %s101_s28, [#allocation4]  }
  0xa4   :  { %200 = dma.done.wait [#allocation4], 32  }
  0xa5   :  { %201 = vsyncadd [#allocation4], 4294967264 }
  0xa6   :  { %108 = vsyncpa [#allocation3], 1 }
  0xa7   :  { %109 = vsyncpa [#allocation6], 1 }
  0xa8   :  { %110 = vsyncpa [#allocation4], 1 }

</bundles_post_ra>
